<compile_context>
chip_gen: v6e
topology: v6e:2x2x1
jax: 0.10.0
libtpu: 0.0.40
codegen_flags: <defaults>
</compile_context>

<pallas_src>
import functools

import jax
import jax.numpy as jnp
from jax.experimental import pallas as pl
from jax.experimental.pallas import tpu as pltpu


def _att_stats_pool_kernel(h_ref, w1_ref, b1_ref, w2s_ref,
                           out_ref,
                           m_sc, z_sc, sph_sc, sph2_sc,
                           *, seq_len, block_t, ragged):
    t = pl.program_id(1)

    @pl.when(t == 0)
    def _():
        m_sc[...] = jnp.full_like(m_sc, -jnp.inf)
        z_sc[...] = jnp.zeros_like(z_sc)
        sph_sc[...] = jnp.zeros_like(sph_sc)
        sph2_sc[...] = jnp.zeros_like(sph2_sc)

    h = h_ref[...]                                                       # (C, Tk), bf16

    # Attention logits for this T block.  The two 1x1 convs are channel matmuls; the
    # BN affine scale is folded into w2 (w2s); BN shift + b2 vanish under softmax
    # shift invariance.
    e = jnp.dot(w1_ref[...], h, preferred_element_type=jnp.float32)      # (A, Tk)
    e = jnp.maximum(e + b1_ref[...], 0.0)                                # ReLU
    e = jnp.dot(w2s_ref[...], e, preferred_element_type=jnp.float32)     # (1, Tk)

    hf = h.astype(jnp.float32)                                           # f32 stats

    if ragged:
        # Last T block extends past the true sequence: mask padded lanes.
        col = jax.lax.broadcasted_iota(jnp.int32, (1, block_t), 1)
        valid = (t * block_t + col) < seq_len                            # (1, Tk)
        e = jnp.where(valid, e, -jnp.inf)                                # p -> 0 there
        hf = jnp.where(valid, hf, 0.0)                                   # kill garbage

    # Online softmax accumulation with unnormalized weights p.
    m_prev = m_sc[...]                                                   # (1, 1)
    m_new = jnp.maximum(m_prev, jnp.max(e, axis=-1, keepdims=True))      # (1, 1)
    corr = jnp.exp(m_prev - m_new)                                       # (1, 1)
    p = jnp.exp(e - m_new)                                               # (1, Tk)

    # Weighted moments on the MXU: contract (1, Tk) against (C, Tk) over Tk -> (1, C),
    # keeping the channel axis in lanes end-to-end (lane-dense output store).
    dn = (((1,), (1,)), ((), ()))
    sph_blk = jax.lax.dot_general(p, hf, dn,
                                  preferred_element_type=jnp.float32)    # (1, C)
    sph2_blk = jax.lax.dot_general(p, hf * hf, dn,
                                   preferred_element_type=jnp.float32)   # (1, C)

    z_sc[...] = corr * z_sc[...] + jnp.sum(p, axis=-1, keepdims=True)
    sph_sc[...] = corr * sph_sc[...] + sph_blk
    sph2_sc[...] = corr * sph2_sc[...] + sph2_blk
    m_sc[...] = m_new

    @pl.when(t == pl.num_programs(1) - 1)
    def _():
        # Single scalar reciprocal instead of dividing the (1, T) alpha row.
        # approx=False: sqrt() near the 1e-4 clamp amplifies relative error, and an
        # exact divide on a (1,1) value is essentially free.
        inv_z = pl.reciprocal(z_sc[...], approx=False)                   # (1, 1)
        mu = sph_sc[...] * inv_z                                         # (1, C)
        ex2 = sph2_sc[...] * inv_z                                       # (1, C)
        # Matches torch broadcasting exactly: sum_t(alpha*h^2 - mu^2) = E[h^2] - T*mu^2
        var = ex2 - float(seq_len) * mu * mu
        sigma = jnp.sqrt(jnp.maximum(var, 1e-4))
        out_ref[...] = jnp.concatenate([mu, sigma], axis=-1).astype(out_ref.dtype)


def _pick_block_t(T, C, itemsize=2, target_bytes=2 * 1024 * 1024, max_bt=4096):
    """T tile sized to ~target_bytes of h per block (multiple of 128), capped by T."""
    bt = target_bytes // max(1, C * itemsize)
    bt = max(128, min(bt, max_bt))
    bt = (bt // 128) * 128
    if bt >= T:
        return T               # single full-T block (full-extent dims are always legal)
    return bt


def att_stats_pooling(h, params, eps=1e-5, block_t=None, use_bf16=True):
    """h: (B, C, T) -> (B, 2*C).  Eval-mode BatchNorm (running stats)."""
    B, C, T = h.shape
    A = params["w1"].shape[0]
    out_dtype = h.dtype

    # Fold BN scale into w2; BN shift and b2 vanish under softmax shift-invariance.
    scale1d = params["bn_gamma"] / jnp.sqrt(params["bn_var"] + eps)
    w2s = (params["w2"] * scale1d).reshape(1, A).astype(jnp.float32)     # (1, A)
    b1 = params["b1"].reshape(A, 1).astype(jnp.float32)                  # (A, 1)

    in_dtype = jnp.bfloat16 if use_bf16 else h.dtype
    h_in = h.astype(in_dtype)
    w1_in = params["w1"].astype(in_dtype)                                # (A, C)

    if block_t is None:
        tk = _pick_block_t(T, C, itemsize=jnp.dtype(in_dtype).itemsize)
    else:
        tk = min(block_t, T)
        if tk < T:
            tk = max(128, (tk // 128) * 128)   # lane-dim tiles must be 128-multiples
    n_t = pl.cdiv(T, tk)
    ragged = (T % tk) != 0

    kernel = functools.partial(_att_stats_pool_kernel,
                               seq_len=T, block_t=tk, ragged=ragged)

    grid_spec = pltpu.PrefetchScalarGridSpec(
        num_scalar_prefetch=0,
        grid=(B, n_t),
        in_specs=[
            pl.BlockSpec((pl.Squeezed(), C, tk), lambda b, t: (b, 0, t)),   # h block
            pl.BlockSpec((A, C), lambda b, t: (0, 0)),                      # w1
            pl.BlockSpec((A, 1), lambda b, t: (0, 0)),                      # b1
            pl.BlockSpec((1, A), lambda b, t: (0, 0)),                      # w2 * bn_scale
        ],
        out_specs=pl.BlockSpec((pl.Squeezed(), 1, 2 * C), lambda b, t: (b, 0, 0)),
        scratch_shapes=[
            pltpu.VMEM((1, 1), jnp.float32),   # running max m
            pltpu.VMEM((1, 1), jnp.float32),   # running Z = sum(p)
            pltpu.VMEM((1, C), jnp.float32),   # running sum(p * h)
            pltpu.VMEM((1, C), jnp.float32),   # running sum(p * h^2)
        ],
    )

    out = pl.pallas_call(
        kernel,
        out_shape=jax.ShapeDtypeStruct((B, 1, 2 * C), out_dtype),
        grid_spec=grid_spec,
        compiler_params=pltpu.CompilerParams(
            dimension_semantics=("parallel", "arbitrary"),
            # ~2 MiB h tiles double-buffered + f32 stats temporaries stay well under
            # this; it also fits v7x's 64 MiB physical VMEM with headroom and lifts
            # v5e's 16 MiB default scoped limit.
            vmem_limit_bytes=48 * 1024 * 1024,
        ),
    )(h_in, w1_in, b1, w2s)

    return out.reshape(B, 2 * C)


def reference(h, params, eps=1e-5):
    """Pure-JAX reference mirroring the PyTorch forward (eval-mode BN)."""
    e = jnp.einsum("ac,bct->bat", params["w1"], h) + params["b1"][None, :, None]
    e = jnp.maximum(e, 0.0)
    e = (e - params["bn_mean"][None, :, None]) / jnp.sqrt(
        params["bn_var"][None, :, None] + eps
    ) * params["bn_gamma"][None, :, None] + params["bn_beta"][None, :, None]
    e = jnp.einsum("a,bat->bt", params["w2"], e) + params["b2"]
    alpha = jax.nn.softmax(e, axis=-1)[:, None, :]                 # (B, 1, T)
    mu = jnp.sum(alpha * h, axis=-1, keepdims=True)                # (B, C, 1)
    sigma = alpha * h**2 - mu**2
    sigma = jnp.sqrt(jnp.clip(jnp.sum(sigma, axis=-1), 0.0001))
    return jnp.concatenate([mu[..., 0], sigma], axis=1)


def make_params(key, in_dim, att_dim):
    ks = jax.random.split(key, 7)
    return {
        # Conv1d(in_dim, att_dim, 1): weight (att_dim, in_dim, 1) -> stored (att_dim, in_dim)
        "w1": jax.random.normal(ks[0], (att_dim, in_dim), jnp.float32) * 0.1,
        "b1": jax.random.normal(ks[1], (att_dim,), jnp.float32) * 0.1,
        # BatchNorm1d(att_dim), inference-mode stats
        "bn_gamma": 1.0 + 0.1 * jax.random.normal(ks[2], (att_dim,), jnp.float32),
        "bn_beta": 0.1 * jax.random.normal(ks[3], (att_dim,), jnp.float32),
        "bn_mean": 0.1 * jax.random.normal(ks[4], (att_dim,), jnp.float32),
        "bn_var": 0.5 + jnp.abs(jax.random.normal(ks[5], (att_dim,), jnp.float32)),
        # Conv1d(att_dim, 1, 1): weight (1, att_dim, 1) -> stored (att_dim,)
        "w2": jax.random.normal(ks[6], (att_dim,), jnp.float32) * 0.1,
        "b2": jnp.zeros((), jnp.float32),
    }


def _check(h, params, **kw):
    out = jax.block_until_ready(att_stats_pooling(h, params, **kw))
    B, C, _ = h.shape
    assert out.shape == (B, 2 * C), out.shape
    # Compare against the full-fidelity reference evaluated on the same bf16-quantized
    # h / w1 that the kernel consumes (stats math stays f32 in both).
    h_q = h.astype(jnp.bfloat16).astype(jnp.float32)
    params_q = dict(params, w1=params["w1"].astype(jnp.bfloat16).astype(jnp.float32))
    ref = reference(h_q, params_q)
    err = jnp.max(jnp.abs(out - ref))
    assert jnp.allclose(out, ref, rtol=2e-3, atol=2e-3), f"max abs err {err}"


if __name__ == "__main__":
    B, in_dim, att_dim = 2, 16, 32   # B>=2 keeps both v7x TensorCores busy
    key = jax.random.PRNGKey(0)
    k_h1, k_h2, k_p = jax.random.split(key, 3)
    params = make_params(k_p, in_dim, att_dim)

    # 1) Small T, single full-T block (auto tile pick).
    h_small = jax.random.normal(k_h1, (B, in_dim, 16), jnp.float32)
    _check(h_small, params)

    # 2) Longer, non-128-divisible T with a forced 128-wide tile: exercises the
    #    online-softmax carry across T blocks and the ragged-tail lane masking.
    h_long = jax.random.normal(k_h2, (B, in_dim, 300), jnp.float32)
    _check(h_long, params, block_t=128)

    print("KERNEL_OK")
</pallas_src>

<mosaic_0001>
module attributes {stable_mosaic.version = 11 : i64} {
  func.func @_att_stats_pool_kernel(%arg0: i32, %arg1: i32, %arg2: memref<1x16x16xbf16, #tpu.memory_space<vmem>>, %arg3: memref<32x16xbf16, #tpu.memory_space<vmem>>, %arg4: memref<32x1xf32, #tpu.memory_space<vmem>>, %arg5: memref<1x32xf32, #tpu.memory_space<vmem>>, %arg6: memref<1x1x32xf32, #tpu.memory_space<vmem>>, %arg7: memref<1x1xf32, #tpu.memory_space<vmem>>, %arg8: memref<1x1xf32, #tpu.memory_space<vmem>>, %arg9: memref<1x16xf32, #tpu.memory_space<vmem>>, %arg10: memref<1x16xf32, #tpu.memory_space<vmem>>) attributes {dimension_semantics = [#tpu.dimension_semantics<parallel>, #tpu.dimension_semantics<arbitrary>], iteration_bounds = array<i64: 2, 1>, scalar_prefetch = 0 : i64, scratch_operands = 4 : i64, tpu.core_type = #tpu.core_type<tc>, window_params = [{transform_indices = @transform_0, window_bounds = array<i64: 1, 16, 16>}, {pipeline_mode = #tpu.pipeline_mode<synchronous>, transform_indices = @transform_1, window_bounds = array<i64: 32, 16>}, {pipeline_mode = #tpu.pipeline_mode<synchronous>, transform_indices = @transform_2, window_bounds = array<i64: 32, 1>}, {pipeline_mode = #tpu.pipeline_mode<synchronous>, transform_indices = @transform_3, window_bounds = array<i64: 1, 32>}, {transform_indices = @transform_4, window_bounds = array<i64: 1, 1, 32>}]} {
    %c0_i32 = arith.constant 0 : i32
    %0 = arith.cmpi eq, %arg1, %c0_i32 : i32
    %1 = arith.extui %0 : i1 to i32
    %c0_i32_0 = arith.constant 0 : i32
    %2 = arith.cmpi ne, %1, %c0_i32_0 : i32
    scf.if %2 {
      %cst_33 = arith.constant 0xFF800000 : f32
      %47 = vector.broadcast %cst_33 : f32 to vector<1x1xf32>
      %c0_34 = arith.constant 0 : index
      %c0_35 = arith.constant 0 : index
      %48 = vector.load %arg7[%c0_34, %c0_35] : memref<1x1xf32, #tpu.memory_space<vmem>>, vector<1x1xf32>
      tpu.vector_store %arg7[%c0_34, %c0_35], %47 {strides = array<i32>} : memref<1x1xf32, #tpu.memory_space<vmem>>, vector<1x1xf32>,
      %cst_36 = arith.constant 0.000000e+00 : f32
      %49 = vector.broadcast %cst_36 : f32 to vector<1x1xf32>
      %c0_37 = arith.constant 0 : index
      %c0_38 = arith.constant 0 : index
      %50 = vector.load %arg8[%c0_37, %c0_38] : memref<1x1xf32, #tpu.memory_space<vmem>>, vector<1x1xf32>
      tpu.vector_store %arg8[%c0_37, %c0_38], %49 {strides = array<i32>} : memref<1x1xf32, #tpu.memory_space<vmem>>, vector<1x1xf32>,
      %cst_39 = arith.constant 0.000000e+00 : f32
      %51 = vector.broadcast %cst_39 : f32 to vector<1x16xf32>
      %c0_40 = arith.constant 0 : index
      %c0_41 = arith.constant 0 : index
      %52 = vector.load %arg9[%c0_40, %c0_41] : memref<1x16xf32, #tpu.memory_space<vmem>>, vector<1x16xf32>
      tpu.vector_store %arg9[%c0_40, %c0_41], %51 {strides = array<i32>} : memref<1x16xf32, #tpu.memory_space<vmem>>, vector<1x16xf32>,
      %cst_42 = arith.constant 0.000000e+00 : f32
      %53 = vector.broadcast %cst_42 : f32 to vector<1x16xf32>
      %c0_43 = arith.constant 0 : index
      %c0_44 = arith.constant 0 : index
      %54 = vector.load %arg10[%c0_43, %c0_44] : memref<1x16xf32, #tpu.memory_space<vmem>>, vector<1x16xf32>
      tpu.vector_store %arg10[%c0_43, %c0_44], %53 {strides = array<i32>} : memref<1x16xf32, #tpu.memory_space<vmem>>, vector<1x16xf32>,
    } else {
    }
    %c0 = arith.constant 0 : index
    %c0_1 = arith.constant 0 : index
    %c0_2 = arith.constant 0 : index
    %3 = vector.load %arg2[%c0, %c0_1, %c0_2] : memref<1x16x16xbf16, #tpu.memory_space<vmem>>, vector<1x16x16xbf16>
    %4 = vector.shape_cast %3 : vector<1x16x16xbf16> to vector<16x16xbf16>
    %c0_3 = arith.constant 0 : index
    %c0_4 = arith.constant 0 : index
    %5 = vector.load %arg3[%c0_3, %c0_4] : memref<32x16xbf16, #tpu.memory_space<vmem>>, vector<32x16xbf16>
    %cst = arith.constant dense<0.000000e+00> : vector<32x16xf32>
    %6 = tpu.matmul %5, %4, %cst {dimension_numbers = #tpu.dot_dimension_numbers<[1], [0], [0], [1], [0, 0, 1, 1], [], []>} : vector<32x16xbf16>, vector<16x16xbf16>, vector<32x16xf32> -> vector<32x16xf32>
    %c0_5 = arith.constant 0 : index
    %c0_6 = arith.constant 0 : index
    %7 = vector.load %arg4[%c0_5, %c0_6] : memref<32x1xf32, #tpu.memory_space<vmem>>, vector<32x1xf32>
    %8 = vector.broadcast %7 : vector<32x1xf32> to vector<32x16xf32>
    %9 = arith.addf %6, %8 : vector<32x16xf32>
    %cst_7 = arith.constant 0.000000e+00 : f32
    %10 = vector.broadcast %cst_7 : f32 to vector<32x16xf32>
    %11 = arith.maximumf %9, %10 : vector<32x16xf32>
    %c0_8 = arith.constant 0 : index
    %c0_9 = arith.constant 0 : index
    %12 = vector.load %arg5[%c0_8, %c0_9] : memref<1x32xf32, #tpu.memory_space<vmem>>, vector<1x32xf32>
    %cst_10 = arith.constant dense<0.000000e+00> : vector<1x16xf32>
    %13 = tpu.matmul %12, %11, %cst_10 {dimension_numbers = #tpu.dot_dimension_numbers<[1], [0], [0], [1], [0, 0, 1, 1], [], []>} : vector<1x32xf32>, vector<32x16xf32>, vector<1x16xf32> -> vector<1x16xf32>
    %14 = arith.extf %4 : vector<16x16xbf16> to vector<16x16xf32>
    %c0_11 = arith.constant 0 : index
    %c0_12 = arith.constant 0 : index
    %15 = vector.load %arg7[%c0_11, %c0_12] : memref<1x1xf32, #tpu.memory_space<vmem>>, vector<1x1xf32>
    %cst_13 = arith.constant dense<0xFF800000> : vector<1xf32>
    %16 = vector.multi_reduction <maximumf>, %13, %cst_13 [1] : vector<1x16xf32> to vector<1xf32>
    %17 = vector.shape_cast %16 : vector<1xf32> to vector<1x1xf32>
    %18 = arith.maximumf %15, %17 : vector<1x1xf32>
    %19 = arith.subf %15, %18 : vector<1x1xf32>
    %20 = math.exp %19 : vector<1x1xf32>
    %21 = vector.broadcast %18 : vector<1x1xf32> to vector<1x16xf32>
    %22 = arith.subf %13, %21 : vector<1x16xf32>
    %23 = math.exp %22 : vector<1x16xf32>
    %cst_14 = arith.constant dense<0.000000e+00> : vector<1x16xf32>
    %24 = tpu.matmul %23, %14, %cst_14 {dimension_numbers = #tpu.dot_dimension_numbers<[1], [1], [0], [0], [0, 0, 1, 0], [], []>} : vector<1x16xf32>, vector<16x16xf32>, vector<1x16xf32> -> vector<1x16xf32>
    %25 = arith.mulf %14, %14 : vector<16x16xf32>
    %cst_15 = arith.constant dense<0.000000e+00> : vector<1x16xf32>
    %26 = tpu.matmul %23, %25, %cst_15 {dimension_numbers = #tpu.dot_dimension_numbers<[1], [1], [0], [0], [0, 0, 1, 0], [], []>} : vector<1x16xf32>, vector<16x16xf32>, vector<1x16xf32> -> vector<1x16xf32>
    %c0_16 = arith.constant 0 : index
    %c0_17 = arith.constant 0 : index
    %27 = vector.load %arg8[%c0_16, %c0_17] : memref<1x1xf32, #tpu.memory_space<vmem>>, vector<1x1xf32>
    %28 = arith.mulf %20, %27 : vector<1x1xf32>
    %cst_18 = arith.constant dense<0.000000e+00> : vector<1xf32>
    %29 = vector.multi_reduction <add>, %23, %cst_18 [1] : vector<1x16xf32> to vector<1xf32>
    %30 = vector.shape_cast %29 : vector<1xf32> to vector<1x1xf32>
    %31 = arith.addf %28, %30 : vector<1x1xf32>
    %c0_19 = arith.constant 0 : index
    %c0_20 = arith.constant 0 : index
    %32 = vector.load %arg8[%c0_19, %c0_20] : memref<1x1xf32, #tpu.memory_space<vmem>>, vector<1x1xf32>
    tpu.vector_store %arg8[%c0_19, %c0_20], %31 {strides = array<i32>} : memref<1x1xf32, #tpu.memory_space<vmem>>, vector<1x1xf32>,
    %c0_21 = arith.constant 0 : index
    %c0_22 = arith.constant 0 : index
    %33 = vector.load %arg9[%c0_21, %c0_22] : memref<1x16xf32, #tpu.memory_space<vmem>>, vector<1x16xf32>
    %34 = vector.broadcast %20 : vector<1x1xf32> to vector<1x16xf32>
    %35 = arith.mulf %34, %33 : vector<1x16xf32>
    %36 = arith.addf %35, %24 : vector<1x16xf32>
    %c0_23 = arith.constant 0 : index
    %c0_24 = arith.constant 0 : index
    %37 = vector.load %arg9[%c0_23, %c0_24] : memref<1x16xf32, #tpu.memory_space<vmem>>, vector<1x16xf32>
    tpu.vector_store %arg9[%c0_23, %c0_24], %36 {strides = array<i32>} : memref<1x16xf32, #tpu.memory_space<vmem>>, vector<1x16xf32>,
    %c0_25 = arith.constant 0 : index
    %c0_26 = arith.constant 0 : index
    %38 = vector.load %arg10[%c0_25, %c0_26] : memref<1x16xf32, #tpu.memory_space<vmem>>, vector<1x16xf32>
    %39 = vector.broadcast %20 : vector<1x1xf32> to vector<1x16xf32>
    %40 = arith.mulf %39, %38 : vector<1x16xf32>
    %41 = arith.addf %40, %26 : vector<1x16xf32>
    %c0_27 = arith.constant 0 : index
    %c0_28 = arith.constant 0 : index
    %42 = vector.load %arg10[%c0_27, %c0_28] : memref<1x16xf32, #tpu.memory_space<vmem>>, vector<1x16xf32>
    tpu.vector_store %arg10[%c0_27, %c0_28], %41 {strides = array<i32>} : memref<1x16xf32, #tpu.memory_space<vmem>>, vector<1x16xf32>,
    %c0_29 = arith.constant 0 : index
    %c0_30 = arith.constant 0 : index
    %43 = vector.load %arg7[%c0_29, %c0_30] : memref<1x1xf32, #tpu.memory_space<vmem>>, vector<1x1xf32>
    tpu.vector_store %arg7[%c0_29, %c0_30], %18 {strides = array<i32>} : memref<1x1xf32, #tpu.memory_space<vmem>>, vector<1x1xf32>,
    %c0_i32_31 = arith.constant 0 : i32
    %44 = arith.cmpi eq, %arg1, %c0_i32_31 : i32
    %45 = arith.extui %44 : i1 to i32
    %c0_i32_32 = arith.constant 0 : i32
    %46 = arith.cmpi ne, %45, %c0_i32_32 : i32
    scf.if %46 {
      %c0_33 = arith.constant 0 : index
      %c0_34 = arith.constant 0 : index
      %47 = vector.load %arg8[%c0_33, %c0_34] : memref<1x1xf32, #tpu.memory_space<vmem>>, vector<1x1xf32>
      %48 = tpu.reciprocal %47 : vector<1x1xf32> -> vector<1x1xf32>
      %c0_35 = arith.constant 0 : index
      %c0_36 = arith.constant 0 : index
      %49 = vector.load %arg9[%c0_35, %c0_36] : memref<1x16xf32, #tpu.memory_space<vmem>>, vector<1x16xf32>
      %50 = vector.broadcast %48 : vector<1x1xf32> to vector<1x16xf32>
      %51 = arith.mulf %49, %50 : vector<1x16xf32>
      %c0_37 = arith.constant 0 : index
      %c0_38 = arith.constant 0 : index
      %52 = vector.load %arg10[%c0_37, %c0_38] : memref<1x16xf32, #tpu.memory_space<vmem>>, vector<1x16xf32>
      %53 = vector.broadcast %48 : vector<1x1xf32> to vector<1x16xf32>
      %54 = arith.mulf %52, %53 : vector<1x16xf32>
      %cst_39 = arith.constant 1.600000e+01 : f32
      %55 = vector.broadcast %cst_39 : f32 to vector<1x16xf32>
      %56 = arith.mulf %55, %51 : vector<1x16xf32>
      %57 = arith.mulf %56, %51 : vector<1x16xf32>
      %58 = arith.subf %54, %57 : vector<1x16xf32>
      %cst_40 = arith.constant 9.99999974E-5 : f32
      %59 = vector.broadcast %cst_40 : f32 to vector<1x16xf32>
      %60 = arith.maximumf %58, %59 : vector<1x16xf32>
      %61 = math.sqrt %60 : vector<1x16xf32>
      %62 = tpu.concatenate %51, %61 in 1 : vector<1x16xf32>, vector<1x16xf32> -> vector<1x32xf32>
      %c0_41 = arith.constant 0 : index
      %c0_42 = arith.constant 0 : index
      %c0_43 = arith.constant 0 : index
      %63 = vector.load %arg6[%c0_41, %c0_42, %c0_43] : memref<1x1x32xf32, #tpu.memory_space<vmem>>, vector<1x1x32xf32>
      %64 = vector.shape_cast %63 : vector<1x1x32xf32> to vector<1x32xf32>
      %65 = vector.shape_cast %62 : vector<1x32xf32> to vector<1x1x32xf32>
      tpu.vector_store %arg6[%c0_41, %c0_42, %c0_43], %65 {strides = array<i32>} : memref<1x1x32xf32, #tpu.memory_space<vmem>>, vector<1x1x32xf32>,
    } else {
    }
    return
  }
  func.func @transform_0(%arg0: i32, %arg1: i32) -> (i32, i32, i32) {
    %c0_i32 = arith.constant 0 : i32
    %c0_i32_0 = arith.constant 0 : i32
    return %arg0, %c0_i32, %arg1 : i32, i32, i32
  }
  func.func @transform_1(%arg0: i32, %arg1: i32) -> (i32, i32) {
    %c0_i32 = arith.constant 0 : i32
    %c0_i32_0 = arith.constant 0 : i32
    %c0_i32_1 = arith.constant 0 : i32
    return %c0_i32, %c0_i32_0 : i32, i32
  }
  func.func @transform_2(%arg0: i32, %arg1: i32) -> (i32, i32) {
    %c0_i32 = arith.constant 0 : i32
    %c0_i32_0 = arith.constant 0 : i32
    %c0_i32_1 = arith.constant 0 : i32
    return %c0_i32, %c0_i32_0 : i32, i32
  }
  func.func @transform_3(%arg0: i32, %arg1: i32) -> (i32, i32) {
    %c0_i32 = arith.constant 0 : i32
    %c0_i32_0 = arith.constant 0 : i32
    %c0_i32_1 = arith.constant 0 : i32
    return %c0_i32, %c0_i32_0 : i32, i32
  }
  func.func @transform_4(%arg0: i32, %arg1: i32) -> (i32, i32, i32) {
    %c0_i32 = arith.constant 0 : i32
    %c0_i32_0 = arith.constant 0 : i32
    %c0_i32_1 = arith.constant 0 : i32
    return %arg0, %c0_i32, %c0_i32_0 : i32, i32, i32
  }
}

</mosaic_0001>

<bundles_post_ra>
// kernel: tpu_custom_call.1
= control target key start
LH: loop header
LB: loop body
LE: loop exit
PB: predicated region body
PF: predicated region fallthrough
CT: control target
= control target key end

     0   :  { %9 = vsyncpa [#allocation7], 0  ;;  %s1137_s0 = inlined_call_operand.vmem [shape: bf16[2,16,16], index: 0, kind: input, shape index: {}]   ;;  %s1138_s1 = inlined_call_operand.vmem [shape: bf16[32,16], index: 1, kind: input, shape index: {}]   ;;  %s1139_s2 = inlined_call_operand.vmem [shape: f32[32,1], index: 2, kind: input, shape index: {}]   ;;  %s1140_s3 = inlined_call_operand.vmem [shape: f32[1,32], index: 3, kind: input, shape index: {}]   ;;  %s1141_s4 = inlined_call_operand.hbm [shape: f32[2,1,32], index: 4, kind: output, shape index: {}]  }
   0x1   :  { %11 = vsyncpa [#allocation7 + $0x1], 0  ;;  %s989_s15 = smov 0   ;;  %s991_s16 = smov 0  }
   0x2   :  { %s993_s17 = smov 0   ;;  %s995_s18 = smov 0  }
   0x3   :  { %s997_s19 = smov 0   ;;  %s999_s20 = smov 0  }
   0x4 LB: > { %s738_s21 = sadd.s32 4294967295, %s956_s20   ;;  %s739_s22 = sadd.s32 4294967294, %s956_s20   ;;  %s956_s20 = sphi %s999_s20, %s17_s20   ;;  %s952_s19 = sphi %s997_s19, %s1148_s19   ;;  %s948_s18 = sphi %s995_s18, %s1147_s18   ;;  %s944_s17 = sphi %s993_s17, %s1146_s17   ;;  %s940_s16 = sphi %s991_s16, %s1145_s16   ;;  %s936_s15 = sphi %s989_s15, %s1144_s15  }
   0x5   : > { %s29_s23 = sadd.s32 1, %s952_s19  ;;  %s127_s24 = sadd.s32 1, %s944_s17 }
   0x6   : > { %p31_p0 = scmp.ge.s32.totalorder %s29_s23, 2  ;;  %p137_p1 = scmp.ne.s32.totalorder %s944_s17, %s940_s16 }
   0x7   : > { %p138_p2 = scmp.eq.s32.totalorder %s738_s21, 1  ;;  %p143_p3 = scmp.ne.s32.totalorder %s940_s16, %s936_s15 }
   0x8   : > { %s1150_s23 = smov (%p31_p0, %s29_s23), 0  ;;  %p144_p5 = scmp.eq.s32.totalorder %s739_s22, 1 }
   0x9   : > { %p1029_p4 = por %p138_p2, %p137_p1  ;;  %s124_s26 = ssub.s32 %s952_s19, %s1150_s23 }
   0xa   : > { %p742_p6 = scmp.ge.s32.totalorder %s956_s20, 1  ;;  %p125_p7 = scmp.eq.s32.totalorder %s124_s26, 0 }
   0xb   : > { %p1036_p8 = por %p144_p5, %p143_p3  ;;  %p182_p9 = scmp.lt.s32.totalorder %s956_s20, 3 }
   0xc   : > { %s1042_s28 = scalar_select %p125_p7, %s944_s17, %s127_s24  }
   0xd   : > { %p183_p10 = pnand %p742_p6, %p182_p9 }
   0xe   : > { %p210_p11 = scmp.lt.s32.totalorder (!%p183_p10), %s948_s18, 1  ;;  %s962_s6 = smov (!%p183_p10), 16  }
   0xf   : > { %186 = sbr.rel (%p183_p10) target bundleno = 1163 (0x48b), region = 36  ;;  %s208_s7 = sand.u32 (!%p183_p10), 1, %s940_s16  }
  0x10   : > { %s757_s8 = sshll.u32 (!%p183_p10), %s948_s18, 4  ;;  %s209_s9 = scalar_lea.vmem (!%p183_p10), [#allocation6], %s208_s7 }
  0x11   : > { %s657_s14 = scalar_lea.sflag (!%p183_p10), [#allocation7], %s208_s7 }
  0x14   : > { %v869_v0 = vld [vmem:[%s1138_s1] sm:$0xff]   ;;  %vm275_vm0 = vcmask 130048   ;;  %s211_s5 = scalar_select %p210_p11, %s948_s18, 1  ;;  %v238_v1 = vld [vmem:[%s1139_s2 + $0x18] sm:$0xff]  ;;  %v236_v2 = vld [vmem:[%s1139_s2 + $0x8] sm:$0xff]  ;;  %v958_v3 = vmov 0   ;;  %v426_v40 = vlaneseq }
  0x15   : > { %777 = vmatprep.mubr.msk.bf16.mxu0 %vm275_vm0, %v869_v0  ;;  %866 = vset.pattern.permute.xlu0 %v958_v3  ;;  %v237_v4 = vld [vmem:[%s1139_s2 + $0x10] sm:$0xff]  ;;  %v235_v5 = vld [vmem:[%s1139_s2] sm:$0xff]  ;;  %v870_v7 = vld [vmem:[%s1138_s1 + $0x8] sm:$0xff]   ;;  %v959_v9 = vmov 0.0   ;;  %vm960_vm1 = vmmov 0   ;;  %vm336_vm2 = vcmask 261120  }
  0x16   : > { %867 = vset.pattern.permute.xlu1 %v958_v3  ;;  %s760_s10 = sshll.u32 %s211_s5, 3  ;;  %256 = vperm.xlu0 %866, %v238_v1   ;;  %v335_v28 = vld [vmem:[%s1140_s3] sm:$0x1]  ;;  %vm226_vm3 = vcmask 122880   ;;  %vm223_vm4 = vcmask 0   ;;  %v961_v30 = vmov -inf  }
  0x17   : > { %246 = vperm.xlu1 %867, %v236_v2   ;;  %s217_s13 = scalar_lea.vmem %s1137_s0, %s760_s10  ;;  %781 = vmatprep.subr.mxu1 %v959_v9  ;;  %227 = vst.msk [vmem:[#allocation4] sm:$0x1] %vm226_vm3, %v959_v9  ;;  %228 = vst.msk [vmem:[#allocation5] sm:$0x1] %vm226_vm3, %v959_v9  ;;  %v427_v41 = vshrl.u32 %v426_v40, 7  ;;  %s669_s10 = sshll.u32 %s209_s9, 4  ;;  %s670_s10 = int_to_ptr.vmem [resolvable:$true] %s669_s10 }
  0x18   : > { %v229_v6 = vld [vmem:[%s217_s13] sm:$0xff]   ;;  %789 = vmatprep.mubr.msk.f32.mxu1 %vm960_vm1, %v959_v9  ;;  %224 = vst.msk [vmem:[#allocation2] sm:$0x1] %vm223_vm4, %v961_v30  ;;  %225 = vst.msk [vmem:[#allocation3] sm:$0x1] %vm223_vm4, %v959_v9  ;;  %vm654_vm7 = vcmask 253952   ;;  %s1096_s13 = scalar_lea.hbm %s1141_s4, %s757_s8 }
  0x19   : > { %775 = vmatprep.subr.bf16.mxu0 %v229_v6  ;;  %v411_v8 = vunpack.c.h.bf16 %v229_v6  ;;  %v410_v10 = vunpack.c.l.bf16 %v229_v6  ;;  %v428_v42 = vsub.s32 0, %v427_v41  ;;  %s880_s21 = scalar_lea.vmem %s670_s10, 16  ;;  %s963_s18 = smov [#allocation6]  }
  0x1a   : > { %251 = vperm.xlu0 %866, %v237_v4   ;;  %776 = vmatpush3.bf16.msra.mxu0 %v229_v6  ;;  %p881_p12 = scmp.ne.s32.totalorder %s670_s10, %s880_s21  ;;  %s884_s22 = sshll.u32 %s963_s18, 4  ;;  %s885_s22 = int_to_ptr.vmem [resolvable:$false] %s884_s22 }
  0x1b   : > { %241 = vperm.xlu1 %867, %v235_v5   ;;  %792 = vmatprep.subr.mxu0 %v959_v9  ;;  %v513_v26 = vmul.f32 %v411_v8, %v411_v8  ;;  %v512_v29 = vmul.f32 %v410_v10, %v410_v10  ;;  %s886_s24 = scalar_lea.vmem %s885_s22, 32  ;;  %p887_p1 = scmp.lt.s32.totalorder %s670_s10, %s885_s22 }
  0x1c   : > { %p882_p13 = pnand %p881_p12, %p1029_p4  ;;  %p888_p2 = scmp.lt.s32.totalorder %s886_s24, %s880_s21 }
  0x1d   : > { %778 = vmatmul.mubr.msk.bf16.vlgmr.msra.gmra.mxu0 %vm275_vm0, %v870_v7 }
  0x1e   : > { %793 = vmatpush3.xpose.msk.msra.mxu0 %vm275_vm0, %v411_v8  ;;  %796 = vmatprep.mubr.msk.f32.mxu0 %vm960_vm1, %v959_v9  ;;  %v598_v57 = vld [vmem:[#allocation4] sm:$0x1]  ;;  %v611_v58 = vld [vmem:[#allocation5] sm:$0x1]  ;;  %p883_p0 = pneg %p882_p13  ;;  %p889_p3 = por %p888_p2, %p887_p1 }
  0x1f   : > { %794 = vmatprep.subr.mxu0 %v959_v9  ;;  %v412_v34 = vld [vmem:[#allocation2] sm:$0x1]  ;;  %v590_v49 = vld [vmem:[#allocation3] sm:$0x1] }
  0x20   : > { %p890_p5 = pnand %p889_p3, %p883_p0 }
  0x22   : > { %795 = vmatpush3.xpose.msk.msra.mxu0 %vm275_vm0, %v410_v10 }
  0x91   : > { %v257_v11 = vpop.permute.xlu0 %256 }
  0x92   : > { %v247_v12 = vpop.permute.xlu1 %246 }
  0x95   : > { %v252_v14 = vpop.permute.xlu0 %251 }
  0x96   : > { %v242_v19 = vpop.permute.xlu1 %241 }
  0xdd   : > { %v779_v13 = vpop.f32.mrf.mxu0 }
  0xde   : > { %v325_v17 = vadd.f32 %v779_v13, %v252_v14 }
  0xdf   : > { %v316_v15 = vpop.f32.mrf.mxu0 }
  0xe0   : > { %v333_v23 = vmax.f32 %v325_v17, 0.0  ;;  %v317_v24 = vadd.f32 %v316_v15, %v242_v19 }
  0xe1   : > { %v780_v16 = vpop.f32.mrf.mxu0 }
  0xe2   : > { %v328_v18 = vadd.f32 %v780_v16, %v257_v11  ;;  %v331_v27 = vmax.f32 %v317_v24, 0.0 }
  0xe3   : > { %v319_v20 = vpop.f32.mrf.mxu0 }
  0xe4   : > { %v334_v21 = vmax.f32 %v328_v18, 0.0  ;;  %v320_v22 = vadd.f32 %v319_v20, %v247_v12 }
  0xe6   : > { %782 = vmatpush3.msra.mxu1 %v334_v21  ;;  %v332_v25 = vmax.f32 %v320_v22, 0.0 }
  0xe7   : > { %783 = vmatprep.subr.mxu1 %v959_v9 }
  0xe8   : > { %784 = vmatpush3.msra.mxu1 %v333_v23 }
  0xe9   : > { %785 = vmatprep.subr.mxu1 %v959_v9 }
  0xea   : > { %786 = vmatpush3.msra.mxu1 %v332_v25 }
  0xeb   : > { %787 = vmatprep.subr.mxu1 %v959_v9 }
  0xec   : > { %788 = vmatpush3.msra.mxu1 %v331_v27 }
  0xed   : > { %790 = vmatmul.mubr.msk.f32.vlgmr.msra.gmra.mxu1 %vm336_vm2, %v335_v28  ;;  %799 = vmatprep.subr.mxu1 %v959_v9 }
  0xee   : > { %800 = vmatpush3.xpose.msk.msra.mxu1 %vm275_vm0, %v513_v26  ;;  %803 = vmatprep.mubr.msk.f32.mxu1 %vm960_vm1, %v959_v9 }
  0xef   : > { %801 = vmatprep.subr.mxu1 %v959_v9 }
  0xf2   : > { %802 = vmatpush3.xpose.msk.msra.mxu1 %vm275_vm0, %v512_v29 }
 0x1ad   : > { %v406_v31 = vpop.f32.mrf.mxu1 }
 0x1ae   : > { %v414_v32 = vsel %vm226_vm3, %v406_v31, -inf }
 0x1af   : > { %415 = vmax.xlane.f32.xlu0 %v414_v32  ;;  %v791_v33 = vpop.f32.mrf.mxu1 }
 0x238   : > { %v416_v35 = vpop.xlane.xlu0 %415 }
 0x239   : > { %v417_v36 = vmax.f32 %v412_v34, %v416_v35 }
 0x23b   : > { %v418_v37 = vsub.f32 %v412_v34, %v417_v36  ;;  %615 = vst.msk [vmem:[#allocation2] sm:$0x1] %vm223_vm4, %v417_v36  ;;  %423 = vperm.xlu1 %867, %v417_v36  }
 0x23d   : > { %v419_v38 = vmul.f32 1.442695, %v418_v37 }
 0x23f   : > { %872 = vpow2.f32 %v419_v38 }
 0x24c   : > { %v873_v39 = vpop.eup %872 }
 0x24d   : > { %601 = vperm.xlu0 %866, %v873_v39   ;;  %v591_v50 = vmul.f32 %v873_v39, %v590_v49 }
 0x2b6   : > { %v424_v43 = vpop.permute.xlu1 %423 }
 0x2b7   : > { %v429_v44 = vrot.slane %v424_v43, %v428_v42 }
 0x2b9   : > { %v430_v45 = vsub.f32 %v406_v31, %v429_v44 }
 0x2bb   : > { %v431_v46 = vmul.f32 1.442695, %v430_v45 }
 0x2bd   : > { %874 = vpow2.f32 %v431_v46 }
 0x2c8   : > { %v602_v55 = vpop.permute.xlu0 %601 }
 0x2c9   : > { %v607_v56 = vrot.slane %v602_v55, %v428_v42 }
 0x2ca   : > { %v875_v47 = vpop.eup %874 }
 0x2cb   : > { %797 = vmatmul.mubr.msk.f32.vlgmr.msra.gmra.mxu0 %vm275_vm0, %v875_v47  ;;  %804 = vmatmul.mubr.msk.f32.vlgmr.msra.gmra.mxu1 %vm275_vm0, %v875_v47  ;;  %v592_v48 = vsel %vm226_vm3, %v875_v47, 0.0  ;;  %v608_v59 = vmul.f32 %v607_v56, %v598_v57  ;;  %v612_v60 = vmul.f32 %v611_v58, %v607_v56 }
 0x2cc   : > { %593 = vadd.xlane.f32.xlu1 %v592_v48 }
 0x355   : > { %v594_v51 = vpop.xlane.xlu1 %593 }
 0x356   : > { %v595_v52 = vadd.f32 %v594_v51, %v591_v50 }
 0x358   : > { %597 = vst.msk [vmem:[#allocation3] sm:$0x1] %vm223_vm4, %v595_v52 }
 0x35f   : > { %v619_v53 = vld [vmem:[#allocation3] sm:$0x1] }
 0x360   : > { %876 = vrcp.f32 %v619_v53 }
 0x36d   : > { %v877_v54 = vpop.eup %876 }
 0x36e   : > { %624 = vperm.xlu1 %867, %v877_v54  }
 0x38b   : > { %v508_v61 = vpop.f32.mrf.mxu0  ;;  %v586_v62 = vpop.f32.mrf.mxu1 }
 0x38c   : > { %v609_v63 = vadd.f32 %v608_v59, %v508_v61  ;;  %v613_v0 = vadd.f32 %v612_v60, %v586_v62 }
 0x38d   : > { %v798_v1 = vpop.f32.mrf.mxu0  ;;  %v805_v2 = vpop.f32.mrf.mxu1 }
 0x38e   : > { %610 = vst.msk [vmem:[#allocation4] sm:$0x1] %vm226_vm3, %v609_v63  ;;  %614 = vst.msk [vmem:[#allocation5] sm:$0x1] %vm226_vm3, %v613_v0 }
 0x395   : > { %v621_v5 = vld [vmem:[#allocation4] sm:$0x1]  ;;  %v632_v8 = vld [vmem:[#allocation5] sm:$0x1] }
 0x3e9   : > { %v625_v3 = vpop.permute.xlu1 %624 }
 0x3ea   : > { %v630_v4 = vrot.slane %v625_v3, %v428_v42 }
 0x3ec   : > { %v631_v6 = vmul.f32 %v630_v4, %v621_v5  ;;  %v633_v9 = vmul.f32 %v632_v8, %v630_v4 }
 0x3ee   : > { %v634_v7 = vmul.f32 16.0, %v631_v6 }
 0x3f0   : > { %v635_v10 = vmul.f32 %v634_v7, %v631_v6 }
 0x3f2   : > { %v636_v11 = vsub.f32 %v633_v9, %v635_v10 }
 0x3f4   : > { %v637_v12 = vmax.f32 %v636_v11, 0.0001 }
 0x3f6   : > { %878 = vrsqrt.f32 %v637_v12  ;;  %vm640_vm5 = vcmp.eq.f32.partialorder %v637_v12, inf  ;;  %v643_v15 = vand.u32 2147483648, %v637_v12  ;;  %vm642_vm6 = vcmp.eq.f32.partialorder %v637_v12, 0.0 }
 0x403   : > { %v879_v13 = vpop.eup %878 }
 0x404   : > { %v639_v14 = vmul.f32 %v879_v13, %v637_v12 }
 0x406   : > { %v641_v16 = vsel %vm640_vm5, %v637_v12, %v639_v14 }
 0x407   : > { %v644_v17 = vsel %vm642_vm6, %v643_v15, %v641_v16 }
 0x408   : > { %v649_v18 = vrot.slane %v644_v17, %v428_v42 }
 0x40a   : > { %650 = vrot.lane.b32.xlu0 %v649_v18, %s962_s6 }
 0x47c   : > { %v651_v19 = vpop.permute.xlu0 %650 }
 0x47d   : > { %v653_v20 = vsel %vm275_vm0, %v631_v6, %v651_v19 }
 0x47e   : > { %655 = vst.msk [vmem:[%s209_s9] sm:$0x1] %vm654_vm7, %v653_v20 }
 0x47f   : > { %893 = shalt.err (!%p890_p5)
}
 0x480   : > { %s894_s26 = scalar_lea.hbm %s1096_s13, 16  ;;  %s898_s5 = scalar_lea.hbm %s1141_s4, 32 }
 0x481   : > { %p895_p6 = scmp.ne.s32.totalorder %s1096_s13, %s894_s26  ;;  %p899_p10 = scmp.lt.s32.totalorder %s1096_s13, %s1141_s4 }
 0x482   : > { %p900_p11 = scmp.lt.s32.totalorder %s898_s5, %s894_s26 }
 0x483   : > { %p896_p7 = pnand %p895_p6, %p1029_p4 }
 0x484   : > { %p901_p12 = por %p900_p11, %p899_p10 }
 0x485   : > { %p897_p9 = pneg %p896_p7 }
 0x487   : > { %p902_p13 = pnand %p901_p12, %p897_p9 }
 0x489   : > { %905 = shalt.err (!%p902_p13)
}
 0x48a   : > { %806 = dma.vmem_to_hbm [thread:$0]  (%p1029_p4), %s670_s10, 16, %s1096_s13, %s657_s14  }
 0x48b PF: > { %p812_p0 = scmp.ge.s32.totalorder %s956_s20, 2  ;;  %s681_s8 = sand.u32 1, %s936_s15  }
 0x48c   : > { %s682_s9 = scalar_lea.sflag [#allocation7], %s681_s8 }
 0x48d   : > { %p809_p1 = pnand %p812_p0, %p1036_p8 }
 0x48f   : > { %p810_p2 = pneg %p809_p1 }
 0x491   : > { %931 = dma.done.wait (%p810_p2), %s682_s9, 16  }
 0x492   : > { %933 = vsyncadd (%p810_p2), %s682_s9, 4294967280  ;;  %s17_s20 = sadd.s32 1, %s956_s20   ;;  %s1144_s15 = smov %s940_s16 }
 0x493   : > { %p14_p3 = scmp.ge.s32.totalorder %s17_s20, 4   ;;  %s1145_s16 = smov %s944_s17 }
 0x494   : > { %s1146_s17 = smov %s1042_s28  ;;  %s1147_s18 = smov %s952_s19 }
 0x495   : > { %s1148_s19 = smov %s1150_s23  ;;  %16 = sbr.rel (!%p14_p3) target bundleno = 4 (0x4), region = 79 }
 0x49a   :  { %686 = vsyncpa [#allocation7], 1 }
 0x49b   :  { %688 = vsyncpa [#allocation7 + $0x1], 1 }

</bundles_post_ra>
